<compile_context>
chip_gen: v5e
topology: v5e:2x2
jax: 0.10.0
libtpu: 0.0.40
codegen_flags: <defaults>
</compile_context>

<pallas_src>
import math
import functools

import jax
import jax.numpy as jnp
from jax.experimental import pallas as pl
from jax.experimental.pallas import tpu as pltpu


def _round_up(n, m):
    return ((n + m - 1) // m) * m


def _head_kernel(x_ref, m_ref, w_ref, wb_ref, o_ref, *, eps):
    # x_ref : (TL, D)  sequence tile of one batch element
    # m_ref : (2, D)   per-batch fused [scale; shift]  (row 0 = ln_w*(1+e1),
    #                                                   row 1 = ln_b*(1+e1)+e0)
    # w_ref : (D, P)   Linear weight, already transposed to [in, out]
    # wb_ref: (1, P)   Linear bias
    # o_ref : (TL, P)
    xf = x_ref[...].astype(jnp.float32)

    # LayerNorm statistics in float32 (matches `super().forward(x.float())`)
    mu = jnp.mean(xf, axis=-1, keepdims=True)
    var = jnp.mean(jnp.square(xf - mu), axis=-1, keepdims=True)
    xn = (xf - mu) * jax.lax.rsqrt(var + eps)

    # Fused LN-affine + modulation: single mul + add per element.
    y = xn * m_ref[0:1, :] + m_ref[1:2, :]
    y = y.astype(x_ref.dtype)  # cast once, right before the MXU matmul

    out = jnp.dot(y, w_ref[...], preferred_element_type=jnp.float32)
    out = out + wb_ref[...].astype(jnp.float32)
    o_ref[...] = out.astype(o_ref.dtype)


def head_forward(x, e, params, *, eps=1e-6, tl=1024):
    """x: [B, L, D], e: [B, D] -> [B, L, P]."""
    B, L, D = x.shape
    ln_w, ln_b, head_w, head_b, modulation = params
    P = head_w.shape[0]  # PyTorch Linear weight is (out, in)

    # --- cheap JAX glue: fold LayerNorm affine into the modulation -------------
    #   ((xn*g + b) * (1+e1) + e0)  ==  xn * [g*(1+e1)] + [b*(1+e1) + e0]
    e_mod = (modulation + e[:, None, :]).astype(jnp.float32)   # (B, 2, D)
    e0 = e_mod[:, 0, :]
    e1 = e_mod[:, 1, :]
    one_p_e1 = 1.0 + e1
    g_eff = ln_w.astype(jnp.float32)[None, :] * one_p_e1            # (B, D)
    b_eff = ln_b.astype(jnp.float32)[None, :] * one_p_e1 + e0       # (B, D)
    mod = jnp.stack([g_eff, b_eff], axis=1)                          # (B, 2, D)

    w_t = head_w.T                # (D, P)
    wb2 = head_b.reshape(1, P)    # (1, P)

    # --- ragged-L handling: cap the tile and pad L to a multiple of it ---------
    tl_eff = min(tl, _round_up(L, 8))
    tl_eff = _round_up(tl_eff, 8)           # f32 sublane granularity
    L_pad = _round_up(L, tl_eff)
    if L_pad != L:
        x = jnp.pad(x, ((0, 0), (0, L_pad - L), (0, 0)))

    grid = (B, L_pad // tl_eff)
    kernel = functools.partial(_head_kernel, eps=eps)

    out = pl.pallas_call(
        kernel,
        out_shape=jax.ShapeDtypeStruct((B, L_pad, P), x.dtype),
        grid_spec=pltpu.PrefetchScalarGridSpec(
            num_scalar_prefetch=0,
            grid=grid,
            in_specs=[
                pl.BlockSpec((None, tl_eff, D), lambda b, l: (b, l, 0)),  # x tile
                pl.BlockSpec((None, 2, D), lambda b, l: (b, 0, 0)),       # fused mod
                pl.BlockSpec((D, P), lambda b, l: (0, 0)),                # weight
                pl.BlockSpec((1, P), lambda b, l: (0, 0)),                # bias
            ],
            out_specs=pl.BlockSpec((None, tl_eff, P), lambda b, l: (b, l, 0)),
        ),
        compiler_params=pltpu.CompilerParams(
            dimension_semantics=("parallel", "parallel"),
            vmem_limit_bytes=64 * 1024 * 1024,
        ),
    )(x, mod, w_t, wb2)

    if L_pad != L:
        out = out[:, :L, :]
    return out


def _reference(x, e, params, eps=1e-6):
    ln_w, ln_b, head_w, head_b, modulation = params
    e_mod = modulation + e[:, None, :]
    e0, e1 = e_mod[:, 0:1, :], e_mod[:, 1:2, :]
    xf = x.astype(jnp.float32)
    mu = jnp.mean(xf, axis=-1, keepdims=True)
    var = jnp.mean(jnp.square(xf - mu), axis=-1, keepdims=True)
    xn = (xf - mu) * jax.lax.rsqrt(var + eps) * ln_w + ln_b
    xn = xn.astype(x.dtype)
    y = xn * (1.0 + e1) + e0
    return jnp.einsum("bld,pd->blp", y, head_w) + head_b


if __name__ == "__main__":
    # Module hyper-parameters (small, TPU-tile friendly)
    dim = 128
    out_dim = 4
    patch_size = (1, 2, 2)
    P = math.prod(patch_size) * out_dim  # 16
    eps = 1e-6

    key = jax.random.PRNGKey(0)
    k = jax.random.split(key, 7)

    # Deterministic synthetic parameters (same shapes as the PyTorch module)
    ln_w = 1.0 + 0.02 * jax.random.normal(k[2], (dim,), dtype=jnp.float32)
    ln_b = 0.02 * jax.random.normal(k[3], (dim,), dtype=jnp.float32)
    head_w = jax.random.normal(k[4], (P, dim), dtype=jnp.float32) / math.sqrt(dim)
    head_b = 0.01 * jax.random.normal(k[5], (P,), dtype=jnp.float32)
    modulation = jax.random.normal(k[6], (1, 2, dim), dtype=jnp.float32) / math.sqrt(dim)
    params = (ln_w, ln_b, head_w, head_b, modulation)

    ok = True

    # Case 1: L divides the (capped) tile exactly.
    B, L = 2, 64
    x = jax.random.normal(k[0], (B, L, dim), dtype=jnp.float32)
    e = jax.random.normal(k[1], (B, dim), dtype=jnp.float32)
    out = jax.block_until_ready(head_forward(x, e, params, eps=eps))
    ref = _reference(x, e, params, eps=eps)
    ok &= out.shape == (B, L, P)
    ok &= bool(jnp.allclose(out, ref, atol=1e-4, rtol=1e-4))

    # Case 2: ragged L (exercises the tile-cap + padding path).
    B2, L2 = 2, 72
    x2 = jax.random.normal(k[0], (B2, L2, dim), dtype=jnp.float32)
    e2 = jax.random.normal(k[1], (B2, dim), dtype=jnp.float32)
    out2 = jax.block_until_ready(head_forward(x2, e2, params, eps=eps, tl=32))
    ref2 = _reference(x2, e2, params, eps=eps)
    ok &= out2.shape == (B2, L2, P)
    ok &= bool(jnp.allclose(out2, ref2, atol=1e-4, rtol=1e-4))

    assert ok
    print("KERNEL_OK")
</pallas_src>

<mosaic_0001>
module attributes {stable_mosaic.version = 11 : i64} {
  func.func @_head_kernel(%arg0: i32, %arg1: i32, %arg2: memref<1x64x128xf32, #tpu.memory_space<vmem>>, %arg3: memref<1x2x128xf32, #tpu.memory_space<vmem>>, %arg4: memref<128x16xf32, #tpu.memory_space<vmem>>, %arg5: memref<1x16xf32, #tpu.memory_space<vmem>>, %arg6: memref<1x64x16xf32, #tpu.memory_space<vmem>>) attributes {dimension_semantics = [#tpu.dimension_semantics<parallel>, #tpu.dimension_semantics<parallel>], iteration_bounds = array<i64: 2, 1>, scalar_prefetch = 0 : i64, scratch_operands = 0 : i64, tpu.core_type = #tpu.core_type<tc>, window_params = [{transform_indices = @transform_0, window_bounds = array<i64: 1, 64, 128>}, {transform_indices = @transform_1, window_bounds = array<i64: 1, 2, 128>}, {pipeline_mode = #tpu.pipeline_mode<synchronous>, transform_indices = @transform_2, window_bounds = array<i64: 128, 16>}, {pipeline_mode = #tpu.pipeline_mode<synchronous>, transform_indices = @transform_3, window_bounds = array<i64: 1, 16>}, {transform_indices = @transform_4, window_bounds = array<i64: 1, 64, 16>}]} {
    %c0 = arith.constant 0 : index
    %c0_0 = arith.constant 0 : index
    %c0_1 = arith.constant 0 : index
    %0 = vector.load %arg2[%c0, %c0_0, %c0_1] : memref<1x64x128xf32, #tpu.memory_space<vmem>>, vector<1x64x128xf32>
    %1 = vector.shape_cast %0 : vector<1x64x128xf32> to vector<64x128xf32>
    %cst = arith.constant dense<0.000000e+00> : vector<64xf32>
    %2 = vector.multi_reduction <add>, %1, %cst [1] : vector<64x128xf32> to vector<64xf32>
    %3 = vector.shape_cast %2 : vector<64xf32> to vector<64x1xf32>
    %cst_2 = arith.constant 1.280000e+02 : f32
    %4 = vector.broadcast %cst_2 : f32 to vector<64x1xf32>
    %5 = arith.divf %3, %4 : vector<64x1xf32>
    %6 = vector.broadcast %5 : vector<64x1xf32> to vector<64x128xf32>
    %7 = arith.subf %1, %6 : vector<64x128xf32>
    %8 = arith.mulf %7, %7 : vector<64x128xf32>
    %cst_3 = arith.constant dense<0.000000e+00> : vector<64xf32>
    %9 = vector.multi_reduction <add>, %8, %cst_3 [1] : vector<64x128xf32> to vector<64xf32>
    %10 = vector.shape_cast %9 : vector<64xf32> to vector<64x1xf32>
    %cst_4 = arith.constant 1.280000e+02 : f32
    %11 = vector.broadcast %cst_4 : f32 to vector<64x1xf32>
    %12 = arith.divf %10, %11 : vector<64x1xf32>
    %13 = vector.broadcast %5 : vector<64x1xf32> to vector<64x128xf32>
    %14 = arith.subf %1, %13 : vector<64x128xf32>
    %cst_5 = arith.constant 9.99999997E-7 : f32
    %15 = vector.broadcast %cst_5 : f32 to vector<64x1xf32>
    %16 = arith.addf %12, %15 : vector<64x1xf32>
    %17 = math.rsqrt %16 : vector<64x1xf32>
    %18 = vector.broadcast %17 : vector<64x1xf32> to vector<64x128xf32>
    %19 = arith.mulf %14, %18 : vector<64x128xf32>
    %c0_6 = arith.constant 0 : index
    %c0_7 = arith.constant 0 : index
    %c0_8 = arith.constant 0 : index
    %20 = vector.load %arg3[%c0_6, %c0_7, %c0_8] : memref<1x2x128xf32, #tpu.memory_space<vmem>>, vector<1x1x128xf32>
    %21 = vector.shape_cast %20 : vector<1x1x128xf32> to vector<1x128xf32>
    %22 = vector.broadcast %21 : vector<1x128xf32> to vector<64x128xf32>
    %23 = arith.mulf %19, %22 : vector<64x128xf32>
    %c0_9 = arith.constant 0 : index
    %c1 = arith.constant 1 : index
    %c0_10 = arith.constant 0 : index
    %24 = vector.load %arg3[%c0_9, %c1, %c0_10] : memref<1x2x128xf32, #tpu.memory_space<vmem>>, vector<1x1x128xf32>
    %25 = vector.shape_cast %24 : vector<1x1x128xf32> to vector<1x128xf32>
    %26 = vector.broadcast %25 : vector<1x128xf32> to vector<64x128xf32>
    %27 = arith.addf %23, %26 : vector<64x128xf32>
    %c0_11 = arith.constant 0 : index
    %c0_12 = arith.constant 0 : index
    %28 = vector.load %arg4[%c0_11, %c0_12] : memref<128x16xf32, #tpu.memory_space<vmem>>, vector<128x16xf32>
    %cst_13 = arith.constant dense<0.000000e+00> : vector<64x16xf32>
    %29 = tpu.matmul %27, %28, %cst_13 {dimension_numbers = #tpu.dot_dimension_numbers<[1], [0], [0], [1], [0, 0, 1, 1], [], []>} : vector<64x128xf32>, vector<128x16xf32>, vector<64x16xf32> -> vector<64x16xf32>
    %c0_14 = arith.constant 0 : index
    %c0_15 = arith.constant 0 : index
    %30 = vector.load %arg5[%c0_14, %c0_15] : memref<1x16xf32, #tpu.memory_space<vmem>>, vector<1x16xf32>
    %31 = vector.broadcast %30 : vector<1x16xf32> to vector<64x16xf32>
    %32 = arith.addf %29, %31 : vector<64x16xf32>
    %c0_16 = arith.constant 0 : index
    %c0_17 = arith.constant 0 : index
    %c0_18 = arith.constant 0 : index
    %33 = vector.load %arg6[%c0_16, %c0_17, %c0_18] : memref<1x64x16xf32, #tpu.memory_space<vmem>>, vector<1x64x16xf32>
    %34 = vector.shape_cast %33 : vector<1x64x16xf32> to vector<64x16xf32>
    %35 = vector.shape_cast %32 : vector<64x16xf32> to vector<1x64x16xf32>
    tpu.vector_store %arg6[%c0_16, %c0_17, %c0_18], %35 {strides = array<i32>} : memref<1x64x16xf32, #tpu.memory_space<vmem>>, vector<1x64x16xf32>,
    return
  }
  func.func @transform_0(%arg0: i32, %arg1: i32) -> (i32, i32, i32) {
    %c0_i32 = arith.constant 0 : i32
    %c0_i32_0 = arith.constant 0 : i32
    return %arg0, %arg1, %c0_i32 : i32, i32, i32
  }
  func.func @transform_1(%arg0: i32, %arg1: i32) -> (i32, i32, i32) {
    %c0_i32 = arith.constant 0 : i32
    %c0_i32_0 = arith.constant 0 : i32
    %c0_i32_1 = arith.constant 0 : i32
    return %arg0, %c0_i32, %c0_i32_0 : i32, i32, i32
  }
  func.func @transform_2(%arg0: i32, %arg1: i32) -> (i32, i32) {
    %c0_i32 = arith.constant 0 : i32
    %c0_i32_0 = arith.constant 0 : i32
    %c0_i32_1 = arith.constant 0 : i32
    return %c0_i32, %c0_i32_0 : i32, i32
  }
  func.func @transform_3(%arg0: i32, %arg1: i32) -> (i32, i32) {
    %c0_i32 = arith.constant 0 : i32
    %c0_i32_0 = arith.constant 0 : i32
    %c0_i32_1 = arith.constant 0 : i32
    return %c0_i32, %c0_i32_0 : i32, i32
  }
  func.func @transform_4(%arg0: i32, %arg1: i32) -> (i32, i32, i32) {
    %c0_i32 = arith.constant 0 : i32
    %c0_i32_0 = arith.constant 0 : i32
    return %arg0, %arg1, %c0_i32 : i32, i32, i32
  }
}

</mosaic_0001>

<bundles_post_ra>
// kernel: tpu_custom_call.1
= control target key start
LH: loop header
LB: loop body
LE: loop exit
PB: predicated region body
PF: predicated region fallthrough
CT: control target
= control target key end

     0   :  { %s776_s15 = smov 0   ;;  %s778_s16 = smov 0   ;;  %s1022_s0 = inlined_call_operand.vmem [shape: f32[2,64,128], index: 0, kind: input, shape index: {}]   ;;  %s1023_s1 = inlined_call_operand.vmem [shape: f32[2,2,128], index: 1, kind: input, shape index: {}]   ;;  %s1024_s2 = inlined_call_operand.vmem [shape: f32[128,16], index: 2, kind: input, shape index: {}]   ;;  %s1025_s3 = inlined_call_operand.vmem [shape: f32[1,16], index: 3, kind: input, shape index: {}]   ;;  %s1026_s4 = inlined_call_operand.vmem [shape: f32[2,64,16], index: 4, kind: output, shape index: {}]  }
   0x1   :  { %s780_s17 = smov 0  }
   0x2 LB: > { %s26_s18 = sadd.s32 1, %s744_s16  ;;  %p622_p0 = scmp.ge.s32.totalorder %s748_s17, 1  ;;  %s748_s17 = sphi %s780_s17, %s14_s17   ;;  %s744_s16 = sphi %s778_s16, %s1032_s16   ;;  %s740_s15 = sphi %s776_s15, %s1031_s15  }
   0x3   : > { %p28_p1 = scmp.ge.s32.totalorder %s26_s18, 2  ;;  %p192_p2 = scmp.lt.s32.totalorder %s748_s17, 3 }
   0x5   : > { %s1034_s18 = smov (%p28_p1, %s26_s18), 0  ;;  %p193_p3 = pnand %p622_p0, %p192_p2 }
   0x6   : > { %p231_p4 = scmp.lt.s32.totalorder (!%p193_p3), %s740_s15, 1 }
   0x7   : > { %196 = sbr.rel (%p193_p3) target bundleno = 435 (0x1b3), region = 36 }
   0xc   : > { %s1036_s15 = smov (!%p231_p4, %s740_s15), 1  ;;  %v750_v8 = vmov 128.0   ;;  %v464_v16 = vld [vmem:[%s1024_s2 + $0x78] sm:$0xff]  ;;  %v463_v17 = vld [vmem:[%s1024_s2 + $0x70] sm:$0xff]  ;;  %v462_v49 = vld [vmem:[%s1024_s2 + $0x68] sm:$0xff] }
   0xd   : > { %s630_s19 = sshll.u32 %s1036_s15, 6  ;;  %s625_s20 = sshll.u32 %s1036_s15, 1  ;;  %708 = vrcp.f32 %v750_v8  ;;  %469 = vmatpush.msra.mxu0 %v464_v16  ;;  %633 = vmatpush.msra.mxu2 %v464_v16  ;;  %v461_v50 = vld [vmem:[%s1024_s2 + $0x60] sm:$0xff]  ;;  %v460_v51 = vld [vmem:[%s1024_s2 + $0x58] sm:$0xff]  ;;  %v459_v52 = vld [vmem:[%s1024_s2 + $0x50] sm:$0xff] }
   0xe   : > { %s238_s23 = scalar_lea.vmem %s1022_s0, %s630_s19  ;;  %s806_s26 = scalar_lea.vmem %s1023_s1, %s625_s20  ;;  %632 = vmatpush.msra.mxu1 %v464_v16  ;;  %634 = vmatpush.msra.mxu3 %v464_v16  ;;  %v458_v53 = vld [vmem:[%s1024_s2 + $0x48] sm:$0xff]  ;;  %v457_v54 = vld [vmem:[%s1024_s2 + $0x40] sm:$0xff]  ;;  %v456_v55 = vld [vmem:[%s1024_s2 + $0x38] sm:$0xff] }
   0xf   : > { %v808_v0 = vld [vmem:[%s238_s23 + $0x28] sm:$0xff]  ;;  %v258_v1 = vld [vmem:[%s238_s23 + $0x20] sm:$0xff]  ;;  %v261_v3 = vld [vmem:[%s238_s23 + $0x38] sm:$0xff]  ;;  %470 = vmatpush.msra.mxu0 %v463_v17  ;;  %636 = vmatpush.msra.mxu2 %v463_v17  ;;  %s252_s21 = scalar_lea.vmem %s1026_s4, %s630_s19 }
  0x10   : > { %272 = vadd.xlane.f32.xlu2 %v808_v0  ;;  %270 = vadd.xlane.f32.xlu0 %v258_v1  ;;  %v254_v2 = vld [vmem:[%s238_s23] sm:$0xff]  ;;  %v260_v4 = vld [vmem:[%s238_s23 + $0x30] sm:$0xff]  ;;  %v255_v6 = vld [vmem:[%s238_s23 + $0x8] sm:$0xff] }
  0x11   : > { %262 = vadd.xlane.f32.xlu1 %v254_v2  ;;  %v256_v5 = vld [vmem:[%s238_s23 + $0x10] sm:$0xff]  ;;  %v257_v7 = vld [vmem:[%s238_s23 + $0x18] sm:$0xff]  ;;  %635 = vmatpush.msra.mxu1 %v463_v17  ;;  %v454_v57 = vld [vmem:[%s1024_s2 + $0x28] sm:$0xff] }
  0x12   : > { %637 = vmatpush.msra.mxu3 %v463_v17  ;;  %471 = vmatpush.msra.mxu0 %v462_v49  ;;  %v455_v56 = vld [vmem:[%s1024_s2 + $0x30] sm:$0xff]  ;;  %v453_v58 = vld [vmem:[%s1024_s2 + $0x20] sm:$0xff]  ;;  %v452_v59 = vld [vmem:[%s1024_s2 + $0x18] sm:$0xff] }
  0x13   : > { %v709_v9 = vpop.eup %708  ;;  %639 = vmatpush.msra.mxu2 %v462_v49  ;;  %638 = vmatpush.msra.mxu1 %v462_v49  ;;  %v451_v60 = vld [vmem:[%s1024_s2 + $0x10] sm:$0xff]  ;;  %v450_v61 = vld [vmem:[%s1024_s2 + $0x8] sm:$0xff]  ;;  %v449_v62 = vld [vmem:[%s1024_s2] sm:$0xff] }
  0x14   : > { %v279_v10 = vmul.f32 128.0, %v709_v9  ;;  %vm283_vm0 = vweird.f32 %v709_v9  ;;  %640 = vmatpush.msra.mxu3 %v462_v49  ;;  %472 = vmatpush.msra.mxu0 %v461_v50 }
  0x15   : > { %642 = vmatpush.msra.mxu2 %v461_v50  ;;  %641 = vmatpush.msra.mxu1 %v461_v50 }
  0x16   : > { %v280_v11 = vsub.f32 1.0, %v279_v10  ;;  %643 = vmatpush.msra.mxu3 %v461_v50  ;;  %473 = vmatpush.msra.mxu0 %v460_v51 }
  0x17   : > { %645 = vmatpush.msra.mxu2 %v460_v51  ;;  %644 = vmatpush.msra.mxu1 %v460_v51 }
  0x18   : > { %276 = vadd.xlane.f32.xlu2 %v261_v3  ;;  %274 = vadd.xlane.f32.xlu0 %v260_v4  ;;  %v281_v12 = vmul.f32 %v709_v9, %v280_v11 }
  0x19   : > { %266 = vadd.xlane.f32.xlu1 %v256_v5  ;;  %646 = vmatpush.msra.mxu3 %v460_v51 }
  0x1a   : > { %v282_v13 = vadd.f32 %v709_v9, %v281_v12  ;;  %474 = vmatpush.msra.mxu0 %v459_v52  ;;  %648 = vmatpush.msra.mxu2 %v459_v52 }
  0x1b   : > { %647 = vmatpush.msra.mxu1 %v459_v52  ;;  %649 = vmatpush.msra.mxu3 %v459_v52 }
  0x1c   : > { %v811_v14 = vsel %vm283_vm0, %v709_v9, %v282_v13  ;;  %475 = vmatpush.msra.mxu0 %v458_v53  ;;  %651 = vmatpush.msra.mxu2 %v458_v53 }
  0x1d   : > { %650 = vmatpush.msra.mxu1 %v458_v53  ;;  %652 = vmatpush.msra.mxu3 %v458_v53 }
  0x1e   : > { %476 = vmatpush.msra.mxu0 %v457_v54  ;;  %654 = vmatpush.msra.mxu2 %v457_v54 }
  0x1f   : > { %653 = vmatpush.msra.mxu1 %v457_v54  ;;  %655 = vmatpush.msra.mxu3 %v457_v54 }
  0x20   : > { %264 = vadd.xlane.f32.xlu0 %v255_v6  ;;  %477 = vmatpush.msra.mxu0 %v456_v55 }
  0x21   : > { %268 = vadd.xlane.f32.xlu1 %v257_v7  ;;  %657 = vmatpush.msra.mxu2 %v456_v55 }
  0x22   : > { %656 = vmatpush.msra.mxu1 %v456_v55  ;;  %658 = vmatpush.msra.mxu3 %v456_v55 }
  0x23   : > { %478 = vmatpush.msra.mxu0 %v455_v56  ;;  %660 = vmatpush.msra.mxu2 %v455_v56 }
  0x24   : > { %659 = vmatpush.msra.mxu1 %v455_v56  ;;  %661 = vmatpush.msra.mxu3 %v455_v56  ;;  %v941_v56 = vld [vmem:[%s806_s26 + $0x1] ss:$0 sm:$0xff] }
  0x25   : > { %479 = vmatpush.msra.mxu0 %v454_v57  ;;  %663 = vmatpush.msra.mxu2 %v454_v57 }
  0x26   : > { %662 = vmatpush.msra.mxu1 %v454_v57  ;;  %664 = vmatpush.msra.mxu3 %v454_v57 }
  0x27   : > { %480 = vmatpush.msra.mxu0 %v453_v58  ;;  %666 = vmatpush.msra.mxu2 %v453_v58 }
  0x28   : > { %665 = vmatpush.msra.mxu1 %v453_v58  ;;  %667 = vmatpush.msra.mxu3 %v453_v58 }
  0x29   : > { %481 = vmatpush.msra.mxu0 %v452_v59  ;;  %669 = vmatpush.msra.mxu2 %v452_v59 }
  0x2a   : > { %668 = vmatpush.msra.mxu1 %v452_v59  ;;  %670 = vmatpush.msra.mxu3 %v452_v59 }
  0x2b   : > { %482 = vmatpush.msra.mxu0 %v451_v60  ;;  %672 = vmatpush.msra.mxu2 %v451_v60 }
  0x2c   : > { %671 = vmatpush.msra.mxu1 %v451_v60  ;;  %673 = vmatpush.msra.mxu3 %v451_v60 }
  0x2d   : > { %483 = vmatpush.msra.mxu0 %v450_v61  ;;  %675 = vmatpush.msra.mxu2 %v450_v61 }
  0x2e   : > { %674 = vmatpush.msra.mxu1 %v450_v61  ;;  %676 = vmatpush.msra.mxu3 %v450_v61 }
  0x2f   : > { %484 = vmatpush.msra.mxu0 %v449_v62  ;;  %678 = vmatpush.msra.mxu2 %v449_v62 }
  0x30   : > { %677 = vmatpush.msra.mxu1 %v449_v62  ;;  %679 = vmatpush.msra.mxu3 %v449_v62 }
  0x83   : > { %v273_v15 = vpop.xlane.xlu2 %272  ;;  %v271_v18 = vpop.xlane.xlu0 %270 }
  0x84   : > { %v289_v19 = vmul.f32 %v811_v14, %v271_v18  ;;  %v263_v20 = vpop.xlane.xlu1 %262  ;;  %v290_v36 = vmul.f32 %v811_v14, %v273_v15 }
  0x85   : > { %v285_v21 = vmul.f32 %v811_v14, %v263_v20 }
  0x86   : > { %v821_v22 = vsub.f32 %v258_v1, %v289_v19  ;;  %v846_v40 = vsub.f32 %v808_v0, %v290_v36 }
  0x87   : > { %v823_v23 = vsub.f32 %v254_v2, %v285_v21 }
  0x88   : > { %v305_v24 = vmul.f32 %v821_v22, %v821_v22  ;;  %v306_v45 = vmul.f32 %v846_v40, %v846_v40 }
  0x89   : > { %v301_v25 = vmul.f32 %v823_v23, %v823_v23 }
  0x8a   : > { %317 = vadd.xlane.f32.xlu2 %v305_v24 }
  0x8b   : > { %v277_v26 = vpop.xlane.xlu2 %276  ;;  %309 = vadd.xlane.f32.xlu1 %v301_v25  ;;  %v275_v28 = vpop.xlane.xlu0 %274 }
  0x8c   : > { %v292_v27 = vmul.f32 %v811_v14, %v277_v26  ;;  %v291_v29 = vmul.f32 %v811_v14, %v275_v28  ;;  %v267_v30 = vpop.xlane.xlu1 %266 }
  0x8d   : > { %v287_v32 = vmul.f32 %v811_v14, %v267_v30 }
  0x8e   : > { %v831_v31 = vsub.f32 %v261_v3, %v292_v27  ;;  %v834_v33 = vsub.f32 %v260_v4, %v291_v29 }
  0x8f   : > { %v836_v34 = vsub.f32 %v256_v5, %v287_v32 }
  0x90   : > { %v308_v35 = vmul.f32 %v831_v31, %v831_v31  ;;  %v307_v37 = vmul.f32 %v834_v33, %v834_v33 }
  0x91   : > { %v303_v38 = vmul.f32 %v836_v34, %v836_v34 }
  0x92   : > { %321 = vadd.xlane.f32.xlu0 %v307_v37 }
  0x93   : > { %323 = vadd.xlane.f32.xlu1 %v308_v35  ;;  %313 = vadd.xlane.f32.xlu2 %v303_v38  ;;  %v265_v39 = vpop.xlane.xlu0 %264 }
  0x94   : > { %v286_v41 = vmul.f32 %v811_v14, %v265_v39  ;;  %v269_v42 = vpop.xlane.xlu1 %268 }
  0x95   : > { %v288_v44 = vmul.f32 %v811_v14, %v269_v42 }
  0x96   : > { %v849_v43 = vsub.f32 %v255_v6, %v286_v41 }
  0x97   : > { %v856_v47 = vsub.f32 %v257_v7, %v288_v44 }
  0x98   : > { %v302_v46 = vmul.f32 %v849_v43, %v849_v43 }
  0x99   : > { %v304_v48 = vmul.f32 %v856_v47, %v856_v47 }
  0x9a   : > { %319 = vadd.xlane.f32.xlu0 %v306_v45  ;;  %v931_v45 = vld [vmem:[%s806_s26] ss:$0 sm:$0xff] }
  0x9b   : > { %311 = vadd.xlane.f32.xlu2 %v302_v46 }
  0xa2   : > { %315 = vadd.xlane.f32.xlu0 %v304_v48 }
  0xfd   : > { %v318_v63 = vpop.xlane.xlu2 %317 }
  0xfe   : > { %v329_v0 = vmul.f32 %v318_v63, %v811_v14  ;;  %v310_v1 = vpop.xlane.xlu1 %309 }
  0xff   : > { %v325_v2 = vmul.f32 %v310_v1, %v811_v14 }
 0x100   : > { %v337_v3 = vadd.f32 1e-06, %v329_v0 }
 0x101   : > { %v333_v4 = vadd.f32 1e-06, %v325_v2 }
 0x102   : > { %710 = vrsqrt.f32 %v337_v3  ;;  %vm387_vm4 = vweird.f32 %v337_v3 }
 0x103   : > { %712 = vrsqrt.f32 %v333_v4  ;;  %vm347_vm1 = vweird.f32 %v333_v4 }
 0x105   : > { %v322_v5 = vpop.xlane.xlu0 %321 }
 0x106   : > { %v331_v6 = vmul.f32 %v322_v5, %v811_v14  ;;  %v314_v7 = vpop.xlane.xlu2 %313  ;;  %v324_v8 = vpop.xlane.xlu1 %323 }
 0x107   : > { %v327_v9 = vmul.f32 %v314_v7, %v811_v14  ;;  %v332_v10 = vmul.f32 %v324_v8, %v811_v14 }
 0x108   : > { %v711_v11 = vpop.eup %710  ;;  %v907_v12 = vadd.f32 1e-06, %v331_v6 }
 0x109   : > { %v713_v13 = vpop.eup %712  ;;  %v382_v15 = vmul.f32 %v711_v11, %v337_v3  ;;  %v909_v16 = vadd.f32 1e-06, %v327_v9  ;;  %v911_v17 = vadd.f32 1e-06, %v332_v10  ;;  %vm388_vm3 = vweird.f32 %v711_v11 }
 0x10a   : > { %v342_v18 = vmul.f32 %v713_v13, %v333_v4  ;;  %714 = vrsqrt.f32 %v907_v12  ;;  %vm348_vm2 = vweird.f32 %v713_v13  ;;  %vm389_vm6 = vmor %vm387_vm4, %vm388_vm3  ;;  %vm407_vm7 = vweird.f32 %v907_v12 }
 0x10b   : > { %v383_v19 = vmul.f32 %v711_v11, %v382_v15  ;;  %716 = vrsqrt.f32 %v909_v16  ;;  %vm349_vm5 = vmor %vm347_vm1, %vm348_vm2  ;;  %vm367_vm8 = vweird.f32 %v909_v16  ;;  %vm417_vm11 = vweird.f32 %v911_v17 }
 0x10c   : > { %v343_v20 = vmul.f32 %v713_v13, %v342_v18  ;;  %718 = vrsqrt.f32 %v911_v17 }
 0x10d   : > { %v384_v21 = vmul.f32 0.5, %v383_v19  ;;  %v320_v24 = vpop.xlane.xlu0 %319 }
 0x10e   : > { %v344_v25 = vmul.f32 0.5, %v343_v20  ;;  %v330_v26 = vmul.f32 %v320_v24, %v811_v14  ;;  %v312_v27 = vpop.xlane.xlu2 %311 }
 0x10f   : > { %v385_v28 = vsub.f32 1.5, %v384_v21  ;;  %v326_v29 = vmul.f32 %v312_v27, %v811_v14 }
 0x110   : > { %v918_v30 = vpop.eup %714  ;;  %v345_v32 = vsub.f32 1.5, %v344_v25  ;;  %v920_v35 = vadd.f32 1e-06, %v330_v26 }
 0x111   : > { %v717_v36 = vpop.eup %716  ;;  %v386_v37 = vmul.f32 %v711_v11, %v385_v28  ;;  %v402_v38 = vmul.f32 %v918_v30, %v907_v12  ;;  %v924_v39 = vadd.f32 1e-06, %v326_v29  ;;  %vm408_vm9 = vweird.f32 %v918_v30 }
 0x112   : > { %v926_v41 = vpop.eup %718  ;;  %v346_v42 = vmul.f32 %v713_v13, %v345_v32  ;;  %v362_v44 = vmul.f32 %v717_v36, %v909_v16  ;;  %720 = vrsqrt.f32 %v920_v35  ;;  %vm368_vm10 = vweird.f32 %v717_v36  ;;  %vm954_vm12 = vmor %vm407_vm7, %vm408_vm9 }
 0x113   : > { %v403_v46 = vmul.f32 %v918_v30, %v402_v38  ;;  %v412_v48 = vmul.f32 %v926_v41, %v911_v17  ;;  %722 = vrsqrt.f32 %v924_v39  ;;  %v390_v55 = vsel %vm389_vm6, %v711_v11, %v386_v37  ;;  %vm369_vm14 = vmor %vm367_vm8, %vm368_vm10 }
 0x114   : > { %v363_v49 = vmul.f32 %v717_v36, %v362_v44  ;;  %v350_v50 = vsel %vm349_vm5, %v713_v13, %v346_v42  ;;  %v425_v59 = vmul.f32 %v390_v55, %v821_v22  ;;  %vm418_vm13 = vweird.f32 %v926_v41 }
 0x115   : > { %v404_v51 = vmul.f32 0.5, %v403_v46  ;;  %v413_v52 = vmul.f32 %v926_v41, %v412_v48  ;;  %v316_v53 = vpop.xlane.xlu0 %315  ;;  %v421_v54 = vmul.f32 %v350_v50, %v823_v23  ;;  %vm970_vm15 = vmor %vm417_vm11, %vm418_vm13  ;;  %vm397_vm1 = vweird.f32 %v920_v35 }
 0x116   : > { %v364_v57 = vmul.f32 0.5, %v363_v49  ;;  %v328_v58 = vmul.f32 %v316_v53, %v811_v14  ;;  %v435_v1 = vmul.f32 %v931_v45, %v425_v59  ;;  %vm357_vm2 = vweird.f32 %v924_v39 }
 0x117   : > { %v405_v60 = vsub.f32 1.5, %v404_v51  ;;  %v414_v61 = vmul.f32 0.5, %v413_v52  ;;  %v431_v62 = vmul.f32 %v931_v45, %v421_v54  ;;  %v707_v54 = vld [vmem:[%s1025_s3] ss:$0 sm:$0xff]  ;;  %vm510_vm9 = vcmask 130048  }
 0x118   : > { %v721_v63 = vpop.eup %720  ;;  %v365_v0 = vsub.f32 1.5, %v364_v57  ;;  %v336_v23 = vadd.f32 1e-06, %v328_v58  ;;  %v445_v10 = vadd.f32 %v941_v56, %v435_v1 }
 0x119   : > { %v406_v2 = vmul.f32 %v918_v30, %v405_v60  ;;  %v415_v3 = vsub.f32 1.5, %v414_v61  ;;  %v392_v14 = vmul.f32 %v721_v63, %v920_v35  ;;  %v723_v22 = vpop.eup %722  ;;  %v441_v6 = vadd.f32 %v941_v56, %v431_v62 }
 0x11a   : > { %v366_v5 = vmul.f32 %v717_v36, %v365_v0  ;;  %724 = vrsqrt.f32 %v336_v23  ;;  %v352_v9 = vmul.f32 %v723_v22, %v924_v39  ;;  %vm398_vm0 = vweird.f32 %v721_v63  ;;  %497 = vmatmul.f32.vlgmr.msra.gmra.mxu2 %v445_v10 }
 0x11b   : > { %v416_v7 = vmul.f32 %v926_v41, %v415_v3  ;;  %v393_v8 = vmul.f32 %v721_v63, %v392_v14  ;;  %485 = vmatmul.f32.vlgmr.msra.gmra.mxu0 %v441_v6  ;;  %v410_v12 = vsel %vm954_vm12, %v918_v30, %v406_v2  ;;  %vm358_vm3 = vweird.f32 %v723_v22  ;;  %vm399_vm4 = vmor %vm397_vm1, %vm398_vm0 }
 0x11c   : > { %v370_v11 = vsel %vm369_vm14, %v717_v36, %v366_v5  ;;  %v353_v16 = vmul.f32 %v723_v22, %v352_v9  ;;  %v427_v19 = vmul.f32 %v410_v12, %v834_v33  ;;  %vm359_vm5 = vmor %vm357_vm2, %vm358_vm3  ;;  %vm377_vm7 = vweird.f32 %v336_v23 }
 0x11d   : > { %v394_v15 = vmul.f32 0.5, %v393_v8  ;;  %v423_v18 = vmul.f32 %v370_v11, %v836_v34  ;;  %v420_v20 = vsel %vm970_vm15, %v926_v41, %v416_v7 }
 0x11e   : > { %v354_v24 = vmul.f32 0.5, %v353_v16  ;;  %v437_v25 = vmul.f32 %v931_v45, %v427_v19  ;;  %v428_v30 = vmul.f32 %v420_v20, %v831_v31 }
 0x11f   : > { %v395_v21 = vsub.f32 1.5, %v394_v15  ;;  %v433_v17 = vmul.f32 %v931_v45, %v423_v18 }
 0x120   : > { %v725_v26 = vpop.eup %724  ;;  %v355_v27 = vsub.f32 1.5, %v354_v24  ;;  %v447_v29 = vadd.f32 %v941_v56, %v437_v25  ;;  %v438_v44 = vmul.f32 %v931_v45, %v428_v30 }
 0x121   : > { %v396_v34 = vmul.f32 %v721_v63, %v395_v21  ;;  %v372_v33 = vmul.f32 %v725_v26, %v336_v23  ;;  %v443_v28 = vadd.f32 %v941_v56, %v433_v17  ;;  %vm378_vm6 = vweird.f32 %v725_v26 }
 0x122   : > { %v356_v32 = vmul.f32 %v723_v22, %v355_v27  ;;  %503 = vmatmul.f32.vlgmr.msra.gmra.mxu3 %v447_v29  ;;  %vm379_vm8 = vmor %vm377_vm7, %vm378_vm6  ;;  %v448_v50 = vadd.f32 %v941_v56, %v438_v44 }
 0x123   : > { %v373_v36 = vmul.f32 %v725_v26, %v372_v33  ;;  %v400_v37 = vsel %vm399_vm4, %v721_v63, %v396_v34  ;;  %491 = vmatmul.f32.vlgmr.msra.gmra.mxu1 %v443_v28 }
 0x124   : > { %v426_v35 = vmul.f32 %v400_v37, %v846_v40  ;;  %v360_v39 = vsel %vm359_vm5, %v723_v22, %v356_v32 }
 0x125   : > { %v374_v38 = vmul.f32 0.5, %v373_v36  ;;  %v422_v41 = vmul.f32 %v360_v39, %v849_v43 }
 0x126   : > { %v436_v42 = vmul.f32 %v931_v45, %v426_v35 }
 0x127   : > { %v375_v46 = vsub.f32 1.5, %v374_v38  ;;  %v432_v31 = vmul.f32 %v931_v45, %v422_v41 }
 0x128   : > { %v446_v48 = vadd.f32 %v941_v56, %v436_v42 }
 0x129   : > { %v376_v49 = vmul.f32 %v725_v26, %v375_v46  ;;  %v442_v40 = vadd.f32 %v941_v56, %v432_v31 }
 0x12a   : > { %500 = vmatmul.f32.gmra.mxu2 %v446_v48  ;;  %506 = vmatmul.f32.gmra.mxu3 %v448_v50 }
 0x12b   : > { %v380_v43 = vsel %vm379_vm8, %v725_v26, %v376_v49  ;;  %488 = vmatmul.f32.gmra.mxu0 %v442_v40 }
 0x12c   : > { %v424_v51 = vmul.f32 %v380_v43, %v856_v47 }
 0x12e   : > { %v434_v52 = vmul.f32 %v931_v45, %v424_v51 }
 0x130   : > { %v444_v53 = vadd.f32 %v941_v56, %v434_v52 }
 0x132   : > { %494 = vmatmul.f32.gmra.mxu1 %v444_v53 }
 0x198   : > { %v486_v55 = vpop.f32.mrf.mxu0 }
 0x199   : > { %v487_v57 = vadd.f32 %v707_v54, %v486_v55 }
 0x19b   : > { %511 = vst.msk [vmem:[%s252_s21] sm:$0xff] %vm510_vm9, %v487_v57 }
 0x19d   : > { %v498_v47 = vpop.f32.mrf.mxu2 }
 0x19e   : > { %v499_v45 = vadd.f32 %v707_v54, %v498_v47 }
 0x1a0   : > { %v492_v58 = vpop.f32.mrf.mxu1  ;;  %515 = vst.msk [vmem:[%s252_s21 + $0x20] sm:$0xff] %vm510_vm9, %v499_v45 }
 0x1a1   : > { %v493_v59 = vadd.f32 %v707_v54, %v492_v58 }
 0x1a3   : > { %513 = vst.msk [vmem:[%s252_s21 + $0x10] sm:$0xff] %vm510_vm9, %v493_v59 }
 0x1a5   : > { %v504_v56 = vpop.f32.mrf.mxu3 }
 0x1a6   : > { %v505_v60 = vadd.f32 %v707_v54, %v504_v56 }
 0x1a8   : > { %v489_v61 = vpop.f32.mrf.mxu0  ;;  %517 = vst.msk [vmem:[%s252_s21 + $0x30] sm:$0xff] %vm510_vm9, %v505_v60 }
 0x1a9   : > { %v490_v62 = vadd.f32 %v707_v54, %v489_v61 }
 0x1ab   : > { %512 = vst.msk [vmem:[%s252_s21 + $0x8] sm:$0xff] %vm510_vm9, %v490_v62 }
 0x1ad   : > { %v501_v63 = vpop.f32.mrf.mxu2  ;;  %v507_v23 = vpop.f32.mrf.mxu3 }
 0x1ae   : > { %v502_v0 = vadd.f32 %v707_v54, %v501_v63  ;;  %v508_v2 = vadd.f32 %v707_v54, %v507_v23 }
 0x1af   : > { %v495_v1 = vpop.f32.mrf.mxu1 }
 0x1b0   : > { %516 = vst.msk [vmem:[%s252_s21 + $0x28] sm:$0xff] %vm510_vm9, %v502_v0  ;;  %v496_v3 = vadd.f32 %v707_v54, %v495_v1 }
 0x1b1   : > { %518 = vst.msk [vmem:[%s252_s21 + $0x38] sm:$0xff] %vm510_vm9, %v508_v2 }
 0x1b2   : > { %514 = vst.msk [vmem:[%s252_s21 + $0x18] sm:$0xff] %vm510_vm9, %v496_v3 }
 0x1b3 PF: > { %s14_s17 = sadd.s32 1, %s748_s17   ;;  %s1031_s15 = smov %s744_s16 }
 0x1b4   : > { %p11_p5 = scmp.ge.s32.totalorder %s14_s17, 4   ;;  %s1032_s16 = smov %s1034_s18 }
 0x1b6   :  { %13 = sbr.rel (!%p11_p5) target bundleno = 2 (0x2), region = 69 }

</bundles_post_ra>
